<compile_context>
chip_gen: v6e
topology: v6e:2x2x1
jax: 0.10.0
libtpu: 0.0.40
codegen_flags: <defaults>
</compile_context>

<pallas_src>
import functools

import numpy as np
import jax
import jax.numpy as jnp
from jax import lax
from jax.experimental import pallas as pl
from jax.experimental.pallas import tpu as pltpu


def _pixelcnn_mask() -> np.ndarray:
    # Same mask as the PyTorch module:
    #   mask[:, :, 2, 2] = 0 ; mask[:, :, 1, 1:] = 0 ; mask[:, :, 2] = 0
    m = np.ones((3, 3), np.float32)
    m[2, 2] = 0.0
    m[1, 1:] = 0.0
    m[2, :] = 0.0
    return m


def _cdiv(a: int, b: int) -> int:
    return -(-a // b)


def _ru(a: int, b: int) -> int:
    return _cdiv(a, b) * b


def _pick_block_lanes(l_need: int, wp: int, n: int, max_lane_tiles: int = 16) -> int:
    """Pick flat-output block width (multiple of 128, >= wp so the halo fits)."""
    t_min = max(1, _cdiv(wp, 128))          # next-row tap must fit within 2 blocks
    t_all = max(1, _cdiv(l_need, 128))
    tiles = max(t_min, min(t_all, max_lane_tiles))
    # Prefer >= 2 total grid steps so both v7x TensorCores get work.
    if n * _cdiv(t_all, tiles) < 2 and t_all >= 2 and _cdiv(t_all, 2) >= t_min:
        tiles = _cdiv(t_all, 2)
    return tiles * 128


def _masked_conv_kernel(x0_ref, x1_ref, w_ref, b_ref, o_ref, cat_ref, p_ref,
                        *, offs, cin):
    # x0_ref: (1, Cin, blk)   flat-input block r          (current)
    # x1_ref: (1, Cin, blk)   flat-input block r+1        (halo)
    # w_ref : (Cout, 4*Cin)   packed unmasked-tap weights
    # b_ref : (Cout, 1)       f32 bias
    # o_ref : (1, Cout, blk)  lane-dense flat output block
    # cat_ref: (Cin, 2*blk)   scratch: stitched current+next blocks
    # p_ref : (4*Cin, blk)    scratch: fused im2col slab
    blk = o_ref.shape[-1]

    # Stitch the two consecutive blocks (both stores are lane-tile aligned) so
    # tap-shifted windows never cross a block boundary.
    cat_ref[:, :blk] = x0_ref[0]
    cat_ref[:, blk:] = x1_ref[0]

    # Fused im2col: one (Cin, blk) band per unmasked tap (static unroll, static
    # lane offsets 0 / 1 / 2 / Wp -- no dynamic lane slicing, no reshapes).
    for t, off in enumerate(offs):
        p_ref[t * cin:(t + 1) * cin, :] = cat_ref[:, off:off + blk]

    # Single MXU matmul: (Cout, 4*Cin) @ (4*Cin, blk) -> (Cout, blk), f32 acc.
    acc = jnp.dot(w_ref[...], p_ref[...], preferred_element_type=jnp.float32)
    o_ref[0] = (acc + b_ref[...]).astype(o_ref.dtype)


def masked_conv2d(x_nchw, weight_oihw, bias, *, stride=1, padding=1,
                  compute_dtype=None, block_lanes=None):
    """Forward pass of MaskedConv2d. x: (N, Cin, H, W) -> (N, Cout, H_out, W_out)."""
    n, cin, h, w = x_nchw.shape
    cout = weight_oihw.shape[0]
    sh = sw = int(stride)
    ph = pw = int(padding)
    h_out = (h + 2 * ph - 3) // sh + 1
    w_out = (w + 2 * pw - 3) // sw + 1
    assert h_out > 0 and w_out > 0

    hp, wp = h + 2 * ph, w + 2 * pw          # zero-padded image extent
    h1, w1 = hp - 2, wp - 2                  # stride-1 output extent

    # Unmasked taps of the PixelCNN mask (mask values there are 1.0, so
    # weight * mask == weight) and their flat offsets into the padded image.
    mask2d = _pixelcnn_mask()
    taps = tuple((kh, kw) for kh in range(3) for kw in range(3)
                 if mask2d[kh, kw] != 0.0)   # == ((0,0),(0,1),(0,2),(1,0))
    offs = tuple(kh * wp + kw for kh, kw in taps)
    kpack = len(taps) * cin                  # fused contraction size (4*Cin)

    cdtype = jnp.dtype(compute_dtype) if compute_dtype is not None else x_nchw.dtype

    # Pack only the unmasked taps into a single 2-D (Cout, 4*Cin) weight tile,
    # column order matching the im2col rows built in the kernel.
    w_pack = jnp.concatenate([weight_oihw[:, :, kh, kw] for kh, kw in taps],
                             axis=1).astype(cdtype)             # (Cout, 4*Cin)
    b2 = bias.reshape(cout, 1).astype(jnp.float32)

    # Flat block size (multiple of 128 => lane-dense output stores).
    l_need = h1 * wp                          # flat length holding all valid outputs
    mblk = int(block_lanes) if block_lanes is not None else _pick_block_lanes(l_need, wp, n)
    assert mblk % 128 == 0 and mblk >= wp, "block_lanes must be a multiple of 128 and >= padded width"
    n_mb = _cdiv(l_need, mblk)
    lo = n_mb * mblk
    l_pad = mblk * max(n_mb + 1, _cdiv(hp * wp, mblk))   # room for the r+1 halo block

    # Pad (conv zero-padding), flatten to (N, Cin, Hp*Wp) -- a free row-major
    # reshape of a contiguous array -- and zero-extend to l_pad.
    xp = jnp.pad(x_nchw.astype(cdtype), ((0, 0), (0, 0), (ph, ph), (pw, pw)))
    xf = xp.reshape(n, cin, hp * wp)
    xf = jnp.pad(xf, ((0, 0), (0, 0), (0, l_pad - hp * wp)))

    kernel = functools.partial(_masked_conv_kernel, offs=offs, cin=cin)

    # Explicit VMEM budget (double-buffered blocks + scratch + slack).
    csz = jnp.dtype(cdtype).itemsize
    osz = jnp.dtype(x_nchw.dtype).itemsize
    in_blk = 2 * _ru(cin, 8) * mblk * csz
    out_blk = _ru(cout, 8) * mblk * osz
    w_blk = _ru(cout, 8) * _ru(kpack, 128) * csz
    b_blk = _ru(cout, 8) * 128 * 4
    scr = _ru(cin, 8) * 2 * mblk * csz + _ru(kpack, 8) * mblk * csz
    vmem_limit = 2 * (in_blk + out_blk + w_blk + b_blk) + scr + (8 << 20)
    vmem_limit = int(min(max(vmem_limit, 32 << 20), 64 << 20))   # v7x-safe cap

    out_wide = pl.pallas_call(
        kernel,
        out_shape=jax.ShapeDtypeStruct((n, cout, lo), x_nchw.dtype),
        grid_spec=pltpu.PrefetchScalarGridSpec(
            num_scalar_prefetch=0,
            grid=(n, n_mb),
            in_specs=[
                # Same flat input passed twice: current block r and halo block r+1.
                pl.BlockSpec((1, cin, mblk), lambda b, r: (b, 0, r)),
                pl.BlockSpec((1, cin, mblk), lambda b, r: (b, 0, r + 1)),
                pl.BlockSpec((cout, kpack), lambda b, r: (0, 0)),
                pl.BlockSpec((cout, 1), lambda b, r: (0, 0)),
            ],
            out_specs=pl.BlockSpec((1, cout, mblk), lambda b, r: (b, 0, r)),
            scratch_shapes=[pltpu.VMEM((cin, 2 * mblk), cdtype),
                            pltpu.VMEM((kpack, mblk), cdtype)],
        ),
        compiler_params=pltpu.CompilerParams(
            dimension_semantics=("parallel", "parallel"),
            vmem_limit_bytes=vmem_limit,
        ),
    )(xf, xf, w_pack, b2)

    # Un-flatten the stride-1 wide output and subsample for stride/valid width.
    out1 = out_wide[:, :, :h1 * wp].reshape(n, cout, h1, wp)
    out = out1[:, :, ::sh, :w1:sw]
    assert out.shape == (n, cout, h_out, w_out)
    return out


if __name__ == "__main__":
    N, CIN, COUT, H, W = 2, 4, 8, 16, 16
    STRIDE, PADDING = 1, 1

    key = jax.random.PRNGKey(0)
    kx, kw_, kb = jax.random.split(key, 3)
    x = jax.random.normal(kx, (N, CIN, H, W), jnp.float32)

    # Deterministic Conv2d-style init (uniform in [-1/sqrt(fan_in), 1/sqrt(fan_in)]).
    bound = 1.0 / np.sqrt(CIN * 3 * 3)
    weight = jax.random.uniform(kw_, (COUT, CIN, 3, 3), jnp.float32, -bound, bound)
    bias = jax.random.uniform(kb, (COUT,), jnp.float32, -bound, bound)

    out = masked_conv2d(x, weight, bias, stride=STRIDE, padding=PADDING)
    out = jax.block_until_ready(out)

    # Reference: plain XLA conv with the masked weights (same semantics as PyTorch).
    mask2d = jnp.asarray(_pixelcnn_mask())
    w_masked = weight * mask2d[None, None, :, :]
    ref = lax.conv_general_dilated(
        x, w_masked,
        window_strides=(STRIDE, STRIDE),
        padding=((PADDING, PADDING), (PADDING, PADDING)),
        dimension_numbers=("NCHW", "OIHW", "NCHW"),
        precision=lax.Precision.HIGHEST,
    ) + bias.reshape(1, -1, 1, 1)

    assert out.shape == ref.shape == (N, COUT, H, W)
    # Tolerance covers MXU pass rounding; semantic errors would be ~O(0.1-1).
    np.testing.assert_allclose(np.asarray(out), np.asarray(ref), atol=2e-3, rtol=2e-3)
    print("KERNEL_OK")
</pallas_src>

<mosaic_0001>
module attributes {stable_mosaic.version = 11 : i64} {
  func.func @_masked_conv_kernel(%arg0: i32, %arg1: i32, %arg2: memref<1x4x384xf32, #tpu.memory_space<vmem>>, %arg3: memref<1x4x384xf32, #tpu.memory_space<vmem>>, %arg4: memref<8x16xf32, #tpu.memory_space<vmem>>, %arg5: memref<8x1xf32, #tpu.memory_space<vmem>>, %arg6: memref<1x8x384xf32, #tpu.memory_space<vmem>>, %arg7: memref<4x768xf32, #tpu.memory_space<vmem>>, %arg8: memref<16x384xf32, #tpu.memory_space<vmem>>) attributes {dimension_semantics = [#tpu.dimension_semantics<parallel>, #tpu.dimension_semantics<parallel>], iteration_bounds = array<i64: 2, 1>, scalar_prefetch = 0 : i64, scratch_operands = 2 : i64, tpu.core_type = #tpu.core_type<tc>, window_params = [{transform_indices = @transform_0, window_bounds = array<i64: 1, 4, 384>}, {transform_indices = @transform_1, window_bounds = array<i64: 1, 4, 384>}, {pipeline_mode = #tpu.pipeline_mode<synchronous>, transform_indices = @transform_2, window_bounds = array<i64: 8, 16>}, {pipeline_mode = #tpu.pipeline_mode<synchronous>, transform_indices = @transform_3, window_bounds = array<i64: 8, 1>}, {transform_indices = @transform_4, window_bounds = array<i64: 1, 8, 384>}]} {
    %c0 = arith.constant 0 : index
    %c0_0 = arith.constant 0 : index
    %c0_1 = arith.constant 0 : index
    %0 = vector.load %arg2[%c0, %c0_0, %c0_1] : memref<1x4x384xf32, #tpu.memory_space<vmem>>, vector<1x4x384xf32>
    %1 = vector.shape_cast %0 : vector<1x4x384xf32> to vector<4x384xf32>
    %c0_2 = arith.constant 0 : index
    %c0_3 = arith.constant 0 : index
    %2 = vector.load %arg7[%c0_2, %c0_3] : memref<4x768xf32, #tpu.memory_space<vmem>>, vector<4x384xf32>
    tpu.vector_store %arg7[%c0_2, %c0_3], %1 {strides = array<i32>} : memref<4x768xf32, #tpu.memory_space<vmem>>, vector<4x384xf32>,
    %c0_4 = arith.constant 0 : index
    %c0_5 = arith.constant 0 : index
    %c0_6 = arith.constant 0 : index
    %3 = vector.load %arg3[%c0_4, %c0_5, %c0_6] : memref<1x4x384xf32, #tpu.memory_space<vmem>>, vector<1x4x384xf32>
    %4 = vector.shape_cast %3 : vector<1x4x384xf32> to vector<4x384xf32>
    %c0_7 = arith.constant 0 : index
    %c384 = arith.constant 384 : index
    %5 = vector.load %arg7[%c0_7, %c384] : memref<4x768xf32, #tpu.memory_space<vmem>>, vector<4x384xf32>
    tpu.vector_store %arg7[%c0_7, %c384], %4 {strides = array<i32>} : memref<4x768xf32, #tpu.memory_space<vmem>>, vector<4x384xf32>,
    %c0_8 = arith.constant 0 : index
    %c0_9 = arith.constant 0 : index
    %6 = vector.load %arg7[%c0_8, %c0_9] : memref<4x768xf32, #tpu.memory_space<vmem>>, vector<4x384xf32>
    %c0_10 = arith.constant 0 : index
    %c0_11 = arith.constant 0 : index
    %7 = vector.load %arg8[%c0_10, %c0_11] : memref<16x384xf32, #tpu.memory_space<vmem>>, vector<4x384xf32>
    tpu.vector_store %arg8[%c0_10, %c0_11], %6 {strides = array<i32>} : memref<16x384xf32, #tpu.memory_space<vmem>>, vector<4x384xf32>,
    %c0_12 = arith.constant 0 : index
    %c1 = arith.constant 1 : index
    %8 = vector.load %arg7[%c0_12, %c1] : memref<4x768xf32, #tpu.memory_space<vmem>>, vector<4x384xf32>
    %c4 = arith.constant 4 : index
    %c0_13 = arith.constant 0 : index
    %9 = vector.load %arg8[%c4, %c0_13] : memref<16x384xf32, #tpu.memory_space<vmem>>, vector<4x384xf32>
    tpu.vector_store %arg8[%c4, %c0_13], %8 {strides = array<i32>} : memref<16x384xf32, #tpu.memory_space<vmem>>, vector<4x384xf32>,
    %c0_14 = arith.constant 0 : index
    %c2 = arith.constant 2 : index
    %10 = vector.load %arg7[%c0_14, %c2] : memref<4x768xf32, #tpu.memory_space<vmem>>, vector<4x384xf32>
    %c8 = arith.constant 8 : index
    %c0_15 = arith.constant 0 : index
    %11 = vector.load %arg8[%c8, %c0_15] : memref<16x384xf32, #tpu.memory_space<vmem>>, vector<4x384xf32>
    tpu.vector_store %arg8[%c8, %c0_15], %10 {strides = array<i32>} : memref<16x384xf32, #tpu.memory_space<vmem>>, vector<4x384xf32>,
    %c0_16 = arith.constant 0 : index
    %c18 = arith.constant 18 : index
    %12 = vector.load %arg7[%c0_16, %c18] : memref<4x768xf32, #tpu.memory_space<vmem>>, vector<4x384xf32>
    %c12 = arith.constant 12 : index
    %c0_17 = arith.constant 0 : index
    %13 = vector.load %arg8[%c12, %c0_17] : memref<16x384xf32, #tpu.memory_space<vmem>>, vector<4x384xf32>
    tpu.vector_store %arg8[%c12, %c0_17], %12 {strides = array<i32>} : memref<16x384xf32, #tpu.memory_space<vmem>>, vector<4x384xf32>,
    %c0_18 = arith.constant 0 : index
    %c0_19 = arith.constant 0 : index
    %14 = vector.load %arg4[%c0_18, %c0_19] : memref<8x16xf32, #tpu.memory_space<vmem>>, vector<8x16xf32>
    %c0_20 = arith.constant 0 : index
    %c0_21 = arith.constant 0 : index
    %15 = vector.load %arg8[%c0_20, %c0_21] : memref<16x384xf32, #tpu.memory_space<vmem>>, vector<16x384xf32>
    %cst = arith.constant dense<0.000000e+00> : vector<8x384xf32>
    %16 = tpu.matmul %14, %15, %cst {dimension_numbers = #tpu.dot_dimension_numbers<[1], [0], [0], [1], [0, 0, 1, 1], [], []>} : vector<8x16xf32>, vector<16x384xf32>, vector<8x384xf32> -> vector<8x384xf32>
    %c0_22 = arith.constant 0 : index
    %c0_23 = arith.constant 0 : index
    %17 = vector.load %arg5[%c0_22, %c0_23] : memref<8x1xf32, #tpu.memory_space<vmem>>, vector<8x1xf32>
    %18 = vector.broadcast %17 : vector<8x1xf32> to vector<8x384xf32>
    %19 = arith.addf %16, %18 : vector<8x384xf32>
    %c0_24 = arith.constant 0 : index
    %c0_25 = arith.constant 0 : index
    %c0_26 = arith.constant 0 : index
    %20 = vector.load %arg6[%c0_24, %c0_25, %c0_26] : memref<1x8x384xf32, #tpu.memory_space<vmem>>, vector<1x8x384xf32>
    %21 = vector.shape_cast %20 : vector<1x8x384xf32> to vector<8x384xf32>
    %22 = vector.shape_cast %19 : vector<8x384xf32> to vector<1x8x384xf32>
    tpu.vector_store %arg6[%c0_24, %c0_25, %c0_26], %22 {strides = array<i32>} : memref<1x8x384xf32, #tpu.memory_space<vmem>>, vector<1x8x384xf32>,
    return
  }
  func.func @transform_0(%arg0: i32, %arg1: i32) -> (i32, i32, i32) {
    %c0_i32 = arith.constant 0 : i32
    %c0_i32_0 = arith.constant 0 : i32
    return %arg0, %c0_i32, %arg1 : i32, i32, i32
  }
  func.func @transform_1(%arg0: i32, %arg1: i32) -> (i32, i32, i32) {
    %c1_i32 = arith.constant 1 : i32
    %0 = arith.addi %arg1, %c1_i32 : i32
    %c0_i32 = arith.constant 0 : i32
    %c0_i32_0 = arith.constant 0 : i32
    return %arg0, %c0_i32, %0 : i32, i32, i32
  }
  func.func @transform_2(%arg0: i32, %arg1: i32) -> (i32, i32) {
    %c0_i32 = arith.constant 0 : i32
    %c0_i32_0 = arith.constant 0 : i32
    %c0_i32_1 = arith.constant 0 : i32
    return %c0_i32, %c0_i32_0 : i32, i32
  }
  func.func @transform_3(%arg0: i32, %arg1: i32) -> (i32, i32) {
    %c0_i32 = arith.constant 0 : i32
    %c0_i32_0 = arith.constant 0 : i32
    %c0_i32_1 = arith.constant 0 : i32
    return %c0_i32, %c0_i32_0 : i32, i32
  }
  func.func @transform_4(%arg0: i32, %arg1: i32) -> (i32, i32, i32) {
    %c0_i32 = arith.constant 0 : i32
    %c0_i32_0 = arith.constant 0 : i32
    return %arg0, %c0_i32, %arg1 : i32, i32, i32
  }
}

</mosaic_0001>

<bundles_post_ra>
// kernel: tpu_custom_call.1
= control target key start
LH: loop header
LB: loop body
LE: loop exit
PB: predicated region body
PF: predicated region fallthrough
CT: control target
= control target key end

     0   :  { %s1119_s0 = inlined_call_operand.hbm [shape: f32[2,4,768], index: 0, kind: input, shape index: {}]   ;;  %s1120_s1 = inlined_call_operand.hbm [shape: f32[2,4,768], index: 1, kind: input, shape index: {}]   ;;  %s1121_s2 = inlined_call_operand.vmem [shape: f32[8,16], index: 2, kind: input, shape index: {}]   ;;  %s1122_s3 = inlined_call_operand.vmem [shape: f32[8,1], index: 3, kind: input, shape index: {}]   ;;  %s1123_s4 = inlined_call_operand.hbm [shape: f32[2,8,384], index: 4, kind: output, shape index: {}]  }
   0x1   :  { %1124 = sst [smem:[#allocation13_spill]] %s1119_s0 }
   0x2   :  { %9 = vsyncpa [#allocation5], 0 }
   0x3   :  { %11 = vsyncpa [#allocation5 + $0x1], 0 }
   0x4   :  { %12 = vsyncpa [#allocation8], 0 }
   0x5   :  { %14 = vsyncpa [#allocation8 + $0x1], 0 }
   0x6   :  { %15 = vsyncpa [#allocation6], 0 }
   0x7   :  { %17 = vsyncpa [#allocation6 + $0x1], 0  ;;  %s941_s15 = smov 0   ;;  %s943_s16 = smov 0  }
   0x8   :  { %s945_s17 = smov 0   ;;  %s947_s18 = smov 0  }
   0x9   :  { %s949_s19 = smov 0   ;;  %s951_s20 = smov 0  }
   0xa LB: > { %s658_s21 = sadd.s32 4294967295, %s905_s20   ;;  %s659_s22 = sadd.s32 4294967294, %s905_s20   ;;  %s905_s20 = sphi %s951_s20, %s23_s20   ;;  %s901_s19 = sphi %s949_s19, %s1137_s19   ;;  %s897_s18 = sphi %s947_s18, %s1136_s18   ;;  %s893_s17 = sphi %s945_s17, %s1135_s17   ;;  %s889_s16 = sphi %s943_s16, %s1134_s16   ;;  %s885_s15 = sphi %s941_s15, %s1133_s15  }
   0xb   : > { %s35_s23 = sadd.s32 1, %s901_s19  ;;  %s44_s24 = sadd.s32 1, %s893_s17 }
   0xc   : > { %p37_p0 = scmp.ge.s32.totalorder %s35_s23, 2  ;;  %p51_p1 = scmp.ne.s32.totalorder %s893_s17, %s889_s16 }
   0xd   : > { %p52_p2 = scmp.eq.s32.totalorder %s905_s20, 0  ;;  %p57_p3 = scmp.ne.s32.totalorder %s889_s16, %s885_s15 }
   0xe   : > { %s1139_s23 = smov (%p37_p0, %s35_s23), 0  ;;  %p58_p5 = scmp.eq.s32.totalorder %s658_s21, 0 }
   0xf   : > { %p982_p4 = por %p52_p2, %p51_p1  ;;  %s39_s26 = ssub.s32 %s901_s19, %s1139_s23 }
  0x10   : > { %p155_p6 = scmp.eq.s32.totalorder %s658_s21, 1  ;;  %p42_p7 = scmp.eq.s32.totalorder %s39_s26, 0 }
  0x11   : > { %p988_p8 = por %p58_p5, %p57_p3  ;;  %p161_p10 = scmp.eq.s32.totalorder %s659_s22, 1 }
  0x12   : > { %p992_p9 = por %p155_p6, %p51_p1  ;;  %p703_p13 = scmp.lt.s32.totalorder %s905_s20, 2 }
  0x13   : > { %s997_s29 = scalar_select %p42_p7, %s893_s17, %s44_s24  }
  0x14   : > { %p999_p11 = por %p161_p10, %p57_p3  ;;  %s1006_s5 = sand.u32 1, %s893_s17  }
  0x15   : > { %s680_s6 = smul.u32 12, %s1006_s5  ;;  %p1012_p0 = pnand %p703_p13, %p982_p4 }
  0x16   : > { %s681_s7 = smul.u32 384, %s901_s19  ;;  %p664_p1 = scmp.ge.s32.totalorder %s905_s20, 1 }
  0x17   : > { %s1130_s0 = sld [smem:[#allocation13_spill]]  ;;  %s191_s12 = scalar_lea.vmem [#allocation4], %s680_s6 }
  0x18   : > { %s201_s13 = sshll.u32 %s191_s12, 4  ;;  %s188_s14 = scalar_lea.sflag [#allocation5], %s1006_s5  ;;  %s202_s13 = int_to_ptr.vmem [resolvable:$true] %s201_s13 }
  0x19   : > { %p766_p2 = pneg %p1012_p0  ;;  %s777_s21 = scalar_lea.vmem %s202_s13, 192 }
  0x1a   : > { %p778_p3 = scmp.ne.s32.totalorder %s202_s13, %s777_s21  ;;  %s907_s22 = smov [#allocation4]  }
  0x1b   : > { %s782_s24 = sshll.u32 %s907_s22, 4  ;;  %s783_s24 = int_to_ptr.vmem [resolvable:$false] %s782_s24 }
  0x1c   : > { %p780_p4 = pnand %p778_p3, %p766_p2  ;;  %s784_s25 = scalar_lea.vmem %s783_s24, 384 }
  0x1d   : > { %s199_s11 = scalar_lea.hbm %s1130_s0, %s681_s7  ;;  %p785_p6 = scmp.lt.s32.totalorder %s202_s13, %s783_s24 }
  0x1e   : > { %p781_p5 = pneg %p780_p4  ;;  %p786_p7 = scmp.lt.s32.totalorder %s784_s25, %s777_s21 }
  0x20   : > { %p787_p10 = por %p786_p7, %p785_p6 }
  0x22   : > { %p788_p13 = pnand %p787_p10, %p781_p5 }
  0x24   : > { %791 = shalt.err (!%p788_p13)
}
  0x25   : > { %695 = dma.hbm_to_vmem [thread:$0]  (!%p1012_p0), %s199_s11, 192, %s202_s13, %s188_s14  }
  0x26   : > { %p228_p12 = scmp.lt.s32.totalorder %s905_s20, 3  ;;  %s589_s10 = scalar_lea.hbm %s1120_s1, %s681_s7 }
  0x27   : > { %s590_s21 = scalar_lea.hbm %s589_s10, 192  ;;  %s212_s22 = scalar_lea.vmem [#allocation7], %s680_s6 }
  0x28   : > { %p1034_p3 = pnand %p664_p1, %p228_p12  ;;  %s223_s24 = sshll.u32 %s212_s22, 4  ;;  %s224_s24 = int_to_ptr.vmem [resolvable:$true] %s223_s24 }
  0x29   : > { %s209_s25 = scalar_lea.sflag [#allocation8], %s1006_s5  ;;  %s805_s0 = scalar_lea.vmem %s224_s24, 192 }
  0x2a   : > { %p806_p4 = scmp.ne.s32.totalorder %s224_s24, %s805_s0  ;;  %s908_s11 = smov [#allocation7]  }
  0x2b   : > { %s810_s13 = sshll.u32 %s908_s11, 4  ;;  %s811_s13 = int_to_ptr.vmem [resolvable:$false] %s810_s13 }
  0x2c   : > { %p808_p5 = pnand %p806_p4, %p766_p2  ;;  %s812_s7 = scalar_lea.vmem %s811_s13, 384 }
  0x2d   : > { %p813_p7 = scmp.lt.s32.totalorder %s224_s24, %s811_s13  ;;  %p814_p12 = scmp.lt.s32.totalorder %s812_s7, %s805_s0 }
  0x2e   : > { %p809_p6 = pneg %p808_p5 }
  0x2f   : > { %p815_p1 = por %p814_p12, %p813_p7 }
  0x31   : > { %p816_p10 = pnand %p815_p1, %p809_p6 }
  0x33   : > { %819 = shalt.err (!%p816_p10)
}
  0x34   : > { %698 = dma.hbm_to_vmem [thread:$0]  (!%p1012_p0), %s590_s21, 192, %s224_s24, %s209_s25  }
  0x35   : > { %232 = sbr.rel (%p1034_p3) target bundleno = 425 (0x1a9), region = 36  ;;  %s1047_s5 = sand.u32 (!%p1034_p3), 1, %s889_s16  }
  0x36   : > { %s683_s6 = smul.u32 (!%p1034_p3), 12, %s1047_s5  ;;  %s235_s14 = scalar_lea.sflag (!%p1034_p3), [#allocation5], %s1047_s5 }
  0x38   : > { %s238_s26 = scalar_lea.vmem (!%p1034_p3), [#allocation4], %s683_s6 }
  0x3a   : > { %872 = dma.done.wait (%p988_p8), %s235_s14, 192  }
  0x3b   : > { %874 = vsyncadd (%p988_p8), %s235_s14, 4294967104  ;;  %s244_s0 = scalar_lea.sflag [#allocation8], %s1047_s5  ;;  %s247_s8 = scalar_lea.vmem [#allocation7], %s683_s6 }
  0x3c   : > { %876 = dma.done.wait (%p988_p8), %s244_s0, 192  }
  0x3d   : > { %878 = vsyncadd (%p988_p8), %s244_s0, 4294967104  ;;  %v282_v0 = vld [vmem:[%s238_s26 + $0x8] sm:$0xf]  ;;  %v285_v1 = vld [vmem:[%s247_s8] sm:$0xff]  ;;  %s909_s9 = smov 110   ;;  %s910_s10 = smov 126  }
  0x3e   : > { %284 = vst [vmem:[#allocation2 + $0x8] sm:$0xf] %v282_v0  ;;  %287 = vst [vmem:[#allocation2 + $0xc] sm:$0xff] %v285_v1  ;;  %v281_v2 = vld [vmem:[%s238_s26] sm:$0xff]  ;;  %s911_s27 = smov 127   ;;  %v912_v9 = vmov 0.0  }
  0x3f   : > { %353 = vrot.lane.b32.xlu1 %v281_v2, %s909_s9  ;;  %v325_v3 = vcombine.high %v281_v2, %v281_v2  ;;  %294 = vst [vmem:[#allocation3 + $0x28] sm:$0xf] %v281_v2  ;;  %v349_v6 = vcombine.low %v281_v2, %v281_v2  ;;  %450 = vmatprep.mubr.f32.mxu0 %v912_v9  ;;  %vm913_vm0 = vmmov 0   ;;  %v914_v10 = vmov 0   ;;  %v376_v11 = vld [vmem:[%s1122_s3] sm:$0xff]  ;;  %s684_s25 = smul.u32 24, %s1047_s5 }
  0x40   : > { %673 = vmatprep.subr.mxu1 %v912_v9  ;;  %677 = vmatprep.mubr.msk.f32.mxu1 %vm913_vm0, %v912_v9  ;;  %vm359_vm1 = vcmask 900096   ;;  %vm311_vm2 = vcmask 1039360   ;;  %vm335_vm3 = vcmask 1031168   ;;  %v369_v36 = vld [vmem:[%s1121_s2] sm:$0xff]  ;;  %vm382_vm4 = vcmask 130048   ;;  %s685_s13 = smul.u32 384, %s897_s18 }
  0x41   : > { %295 = vst [vmem:[#allocation3 + $0x10] sm:$0xf] %v325_v3  ;;  %759 = vset.pattern.permute.xlu0 %v914_v10  ;;  %s276_s11 = scalar_lea.vmem [#allocation9], %s684_s25  ;;  %s531_s0 = scalar_lea.sflag [#allocation6], %s1047_s5 }
  0x42   : > { %s547_s7 = sshll.u32 %s276_s11, 4  ;;  %s1077_s26 = scalar_lea.hbm %s1123_s4, %s685_s13  ;;  %s548_s7 = int_to_ptr.vmem [resolvable:$true] %s547_s7 }
  0x43   : > { %s821_s8 = scalar_lea.vmem %s548_s7, 384 }
  0x44   : > { %p822_p8 = scmp.ne.s32.totalorder %s548_s7, %s821_s8 }
  0x45   : > { %v322_v4 = vld [vmem:[#allocation2 + $0x8] sm:$0xff] }
  0x46   : > { %331 = vrot.lane.b32.xlu0 %v322_v4, %s910_s10  ;;  %v350_v5 = vcombine.low %v322_v4, %v322_v4  ;;  %v290_v7 = vld [vmem:[#allocation2 + $0x8] sm:$0xf]  ;;  %v326_v8 = vcombine.high %v322_v4, %v322_v4  ;;  %p823_p0 = pnand %p822_p8, %p992_p9 }
  0x47   : > { %296 = vst [vmem:[#allocation3 + $0x8] sm:$0xf] %v290_v7 }
  0x48   : > { %355 = vrot.lane.b32.xlu1 %v350_v5, %s909_s9  ;;  %p824_p2 = pneg %p823_p0 }
  0x4a   : > { %327 = vrot.lane.b32.xlu0 %v281_v2, %s910_s10 }
  0x4c   : > { %351 = vrot.lane.b32.xlu1 %v349_v6, %s909_s9 }
  0x4e   : > { %305 = vrot.lane.b32.xlu0 %v281_v2, %s911_s27 }
  0x50   : > { %307 = vrot.lane.b32.xlu1 %v350_v5, %s911_s27 }
  0x52   : > { %329 = vrot.lane.b32.xlu0 %v325_v3, %s910_s10 }
  0x54   : > { %333 = vrot.lane.b32.xlu1 %v326_v8, %s910_s10 }
  0x56   : > { %303 = vrot.lane.b32.xlu0 %v349_v6, %s911_s27 }
  0x58   : > { %309 = vrot.lane.b32.xlu1 %v322_v4, %s911_s27 }
  0x5a   : > { %357 = vrot.lane.b32.xlu0 %v322_v4, %s909_s9  ;;  %s915_s9 = smov [#allocation9]  }
  0x5b   : > { %s825_s18 = sshll.u32 %s915_s9, 4  ;;  %s826_s18 = int_to_ptr.vmem [resolvable:$false] %s825_s18 }
  0x5c   : > { %s827_s10 = scalar_lea.vmem %s826_s18, 768  ;;  %p828_p13 = scmp.lt.s32.totalorder %s548_s7, %s826_s18 }
  0x5d   : > { %p829_p3 = scmp.lt.s32.totalorder %s827_s10, %s821_s8 }
  0x5e   : > { %379 = vperm.xlu0 %759, %v376_v11  }
  0x5f   : > { %p830_p4 = por %p829_p3, %p828_p13 }
  0x61   : > { %p831_p5 = pnand %p830_p4, %p824_p2 }
  0xb1   : > { %v354_v12 = vpop.permute.xlu1 %353 }
  0xb8   : > { %v332_v13 = vpop.permute.xlu0 %331 }
  0xba   : > { %v356_v14 = vpop.permute.xlu1 %355 }
  0xbb   : > { %v361_v15 = vsel %vm359_vm1, %v354_v12, %v356_v14 }
  0xbc   : > { %367 = vst [vmem:[#allocation3 + $0x18] sm:$0xf0] %v361_v15  ;;  %v328_v16 = vpop.permute.xlu0 %327 }
  0xbe   : > { %v352_v17 = vpop.permute.xlu1 %351 }
  0xbf   : > { %v360_v18 = vsel %vm359_vm1, %v352_v17, %v354_v12 }
  0xc0   : > { %366 = vst [vmem:[#allocation3] sm:$0xf0] %v360_v18  ;;  %v306_v19 = vpop.permute.xlu0 %305 }
  0xc2   : > { %v308_v20 = vpop.permute.xlu1 %307 }
  0xc3   : > { %v313_v21 = vsel %vm311_vm2, %v306_v19, %v308_v20 }
  0xc4   : > { %319 = vst [vmem:[#allocation3 + $0x10] sm:$0xf0] %v313_v21  ;;  %v330_v22 = vpop.permute.xlu0 %329 }
  0xc5   : > { %v336_v23 = vsel %vm335_vm3, %v328_v16, %v330_v22  ;;  %v337_v24 = vsel %vm335_vm3, %v330_v22, %v332_v13 }
  0xc6   : > { %342 = vst [vmem:[#allocation3] sm:$0xf] %v336_v23  ;;  %343 = vst [vmem:[#allocation3 + $0x18] sm:$0xf] %v337_v24  ;;  %v334_v25 = vpop.permute.xlu1 %333 }
  0xc7   : > { %v338_v26 = vsel %vm335_vm3, %v332_v13, %v334_v25 }
  0xc8   : > { %344 = vst [vmem:[#allocation3 + $0x20] sm:$0xf] %v338_v26  ;;  %v304_v27 = vpop.permute.xlu0 %303 }
  0xc9   : > { %v312_v28 = vsel %vm311_vm2, %v304_v27, %v306_v19 }
  0xca   : > { %318 = vst [vmem:[#allocation3 + $0x28] sm:$0xf0] %v312_v28  ;;  %v310_v29 = vpop.permute.xlu1 %309 }
  0xcb   : > { %v314_v30 = vsel %vm311_vm2, %v308_v20, %v310_v29  ;;  %v371_v35 = vld [vmem:[#allocation3 + $0x10] sm:$0xff] }
  0xcc   : > { %320 = vst [vmem:[#allocation3 + $0x8] sm:$0xf0] %v314_v30  ;;  %v358_v31 = vpop.permute.xlu0 %357 }
  0xcd   : > { %v362_v32 = vsel %vm359_vm1, %v356_v14, %v358_v31  ;;  %v374_v33 = vld [vmem:[#allocation3 + $0x18] sm:$0xff]  ;;  %v373_v34 = vld [vmem:[#allocation3] sm:$0xff] }
  0xce   : > { %368 = vst [vmem:[#allocation3 + $0x20] sm:$0xf0] %v362_v32  ;;  %414 = vmatprep.subr.mxu0 %v374_v33 }
  0xcf   : > { %415 = vmatpush1.msra.mxu0 %v373_v34 }
  0xd0   : > { %416 = vmatprep.subr.mxu0 %v371_v35 }
  0xd1   : > { %v370_v37 = vld [vmem:[#allocation3 + $0x28] sm:$0xff] }
  0xd2   : > { %417 = vmatpush1.msra.mxu0 %v370_v37 }
  0xd3   : > { %665 = vmatmul.mubr.msk.f32.vlgmr.msra.gmra.mxu0 %vm382_vm4, %v369_v36  ;;  %v372_v39 = vld [vmem:[#allocation3 + $0x8] sm:$0xff] }
  0xd5   : > { %v375_v38 = vld [vmem:[#allocation3 + $0x20] sm:$0xff] }
  0xd6   : > { %674 = vmatpush3.msra.mxu1 %v375_v38 }
  0xd7   : > { %675 = vmatprep.subr.mxu1 %v912_v9 }
  0xd8   : > { %676 = vmatpush3.msra.mxu1 %v372_v39 }
  0xd9   : > { %678 = vmatmul.mubr.msk.f32.vlgmr.msra.gmra.mxu1 %vm382_vm4, %v369_v36  ;;  %v380_v40 = vpop.permute.xlu0 %379 }
 0x193   : > { %v452_v41 = vpop.f32.mrf.mxu0 }
 0x194   : > { %v453_v42 = vadd.f32 %v452_v41, %v380_v40 }
 0x195   : > { %v454_v43 = vpop.f32.mrf.mxu0 }
 0x196   : > { %527 = vst [vmem:[%s276_s11] sm:$0xff] %v453_v42  ;;  %v455_v44 = vadd.f32 %v454_v43, %v380_v40 }
 0x198   : > { %528 = vst [vmem:[%s276_s11 + $0x8] sm:$0xff] %v455_v44 }
 0x199   : > { %v523_v45 = vpop.f32.mrf.mxu1 }
 0x19a   : > { %v524_v46 = vadd.f32 %v523_v45, %v380_v40 }
 0x19b   : > { %v679_v47 = vpop.f32.mrf.mxu1 }
 0x19c   : > { %529 = vst [vmem:[%s276_s11 + $0x10] sm:$0xff] %v524_v46 }
 0x19d   : > { %834 = shalt.err (!%p831_p5)
}
 0x19e   : > { %s835_s27 = scalar_lea.hbm %s1077_s26, 384  ;;  %s839_s21 = scalar_lea.hbm %s1123_s4, 768 }
 0x19f   : > { %p836_p6 = scmp.ne.s32.totalorder %s1077_s26, %s835_s27  ;;  %p840_p1 = scmp.lt.s32.totalorder %s1077_s26, %s1123_s4 }
 0x1a0   : > { %p841_p10 = scmp.lt.s32.totalorder %s839_s21, %s835_s27 }
 0x1a1   : > { %p837_p7 = pnand %p836_p6, %p992_p9 }
 0x1a2   : > { %p842_p8 = por %p841_p10, %p840_p1 }
 0x1a3   : > { %p838_p12 = pneg %p837_p7 }
 0x1a5   : > { %p843_p0 = pnand %p842_p8, %p838_p12 }
 0x1a7   : > { %846 = shalt.err (!%p843_p0)
}
 0x1a8   : > { %690 = dma.vmem_to_hbm [thread:$0]  (%p992_p9), %s548_s7, 384, %s1077_s26, %s531_s0  }
 0x1a9 PF: > { %s559_s25 = sand.u32 1, %s885_s15   ;;  %p1132_p2 = scmp.ge.s32.totalorder %s905_s20, 2 }
 0x1aa   : > { %s560_s11 = scalar_lea.sflag [#allocation6], %s559_s25 }
 0x1ab   : > { %p700_p13 = pnand %p1132_p2, %p999_p11 }
 0x1ad   : > { %p701_p3 = pneg %p700_p13 }
 0x1af   : > { %880 = dma.done.wait (%p701_p3), %s560_s11, 384  }
 0x1b0   : > { %882 = vsyncadd (%p701_p3), %s560_s11, 4294966912  ;;  %s23_s20 = sadd.s32 1, %s905_s20   ;;  %s1133_s15 = smov %s889_s16 }
 0x1b1   : > { %p20_p4 = scmp.ge.s32.totalorder %s23_s20, 4   ;;  %s1134_s16 = smov %s893_s17 }
 0x1b2   : > { %s1135_s17 = smov %s997_s29  ;;  %s1136_s18 = smov %s901_s19 }
 0x1b3   : > { %s1137_s19 = smov %s1139_s23  ;;  %22 = sbr.rel (!%p20_p4) target bundleno = 10 (0xa), region = 94 }
 0x1b8   :  { %565 = vsyncpa [#allocation5], 1 }
 0x1b9   :  { %567 = vsyncpa [#allocation5 + $0x1], 1 }
 0x1ba   :  { %568 = vsyncpa [#allocation8], 1 }
 0x1bb   :  { %570 = vsyncpa [#allocation8 + $0x1], 1 }
 0x1bc   :  { %571 = vsyncpa [#allocation6], 1 }
 0x1bd   :  { %573 = vsyncpa [#allocation6 + $0x1], 1 }

</bundles_post_ra>
